<compile_context>
chip_gen: v6e
topology: v6e:2x2x1
jax: 0.10.0
libtpu: 0.0.40
codegen_flags: <defaults>
</compile_context>

<pallas_src>
import functools
import math

import jax
import jax.numpy as jnp
from jax.experimental import pallas as pl
from jax.experimental.pallas import tpu as pltpu

_LOG_EPS = math.log(1e-8)


def _focal_kernel(*refs, gamma, use_softmax, has_mask, hw, tl, ragged):
    if has_mask:
        (x_ref, tgt_ref, mask_ref, alpha_ref,
         loss_out, cnt_out, loss_acc, cnt_acc) = refs
    else:
        (x_ref, tgt_ref, alpha_ref, loss_out, loss_acc) = refs
        mask_ref = cnt_out = cnt_acc = None

    j = pl.program_id(1)
    last_j = pl.num_programs(1) - 1

    # Per-n accumulator init (no cross-n carried state -> N axis can be "parallel").
    @pl.when(j == 0)
    def _():
        loss_acc[...] = jnp.zeros_like(loss_acc)
        if has_mask:
            cnt_acc[...] = jnp.zeros_like(cnt_acc)

    logits = x_ref[0].astype(jnp.float32)            # (C, TL), f32 in-register
    tgt = tgt_ref[0].astype(jnp.int32)               # (1, TL), widened in-register
    alpha = alpha_ref[...].astype(jnp.float32)       # (C, 1)
    num_classes = logits.shape[0]

    # Fused target gather: one bool compare feeds both selections.
    cls = jax.lax.broadcasted_iota(jnp.int32, (num_classes, tl), 0)
    is_t = cls == tgt                                                    # (C, TL) bool
    alpha_t = jnp.sum(jnp.where(is_t, alpha, 0.0), axis=0, keepdims=True)  # (1, TL)

    if use_softmax:
        row_max = jnp.max(logits, axis=0, keepdims=True)                 # (1, TL)
        shifted = logits - row_max                                       # shared by exp & gather
        denom = jnp.sum(jnp.exp(shifted), axis=0, keepdims=True)
        t_shift = jnp.sum(jnp.where(is_t, shifted, 0.0), axis=0, keepdims=True)
        logp_t = t_shift - jnp.log(denom)            # exact log-softmax at the target class
        p_t = jnp.exp(logp_t)
        # matches torch's clamp(1e-8).log(): log(max(p, eps)) == max(log p, log eps)
        logp = jnp.maximum(logp_t, _LOG_EPS)
    else:
        p_t = jnp.sum(jnp.where(is_t, logits, 0.0), axis=0, keepdims=True)
        logp = jnp.log(jnp.maximum(p_t, 1e-8))

    g = float(gamma)
    one_minus = 1.0 - p_t
    if g == 1.0:
        focal = one_minus
    elif g.is_integer() and g >= 0:
        focal = jax.lax.integer_pow(one_minus, int(g))
    else:
        focal = jnp.power(one_minus, g)

    loss = -focal * logp * alpha_t                   # (1, TL)

    m = mask_ref[0].astype(jnp.float32) if has_mask else None

    def _accumulate(valid):
        if has_mask:
            mm = m if valid is None else jnp.where(valid, m, 0.0)
            loss_acc[...] += loss * mm
            cnt_acc[...] += mm
        else:
            if valid is None:
                loss_acc[...] += loss
            else:
                loss_acc[...] += jnp.where(valid, loss, 0.0)

    if ragged:
        # Only the last spatial tile pays for the validity masking.
        @pl.when(j < last_j)
        def _():
            _accumulate(None)

        @pl.when(j == last_j)
        def _():
            lane = jax.lax.broadcasted_iota(jnp.int32, (1, tl), 1)
            _accumulate(j * tl + lane < hw)
    else:
        _accumulate(None)

    # Per-n finalize: single cross-lane (XLU) reduce, broadcast into the
    # lane-dense (1, 1, 128) output block.  Written once per n.
    @pl.when(j == last_j)
    def _():
        loss_out[...] = jnp.full(loss_out.shape, jnp.sum(loss_acc[...]), jnp.float32)
        if has_mask:
            cnt_out[...] = jnp.full(cnt_out.shape, jnp.sum(cnt_acc[...]), jnp.float32)


def _pick_tile_lanes(hw, c, x_itemsize, tgt_itemsize, mask_itemsize, has_mask,
                     max_tile_lanes, vmem_budget_bytes):
    """Largest lane tile whose double-buffered blocks + accumulators fit the budget."""
    per_lane = 2 * c * x_itemsize + 2 * tgt_itemsize + 4          # x, target, loss_acc
    if has_mask:
        per_lane += 2 * mask_itemsize + 4                          # mask, cnt_acc
    tl = min(vmem_budget_bytes // per_lane, max_tile_lanes)
    if hw <= tl:
        return hw                       # single tile spans full HW (block dim == array dim)
    return max(128, (tl // 128) * 128)  # multi-tile: must be a multiple of 128


def focal_softmax_loss(x, target, alpha_vec, *, gamma=1, use_softmax=True,
                       mask=None, max_tile_lanes=32768,
                       vmem_budget_bytes=24 << 20):
    """x: (N, C, H, W), target: (N, H, W) int, alpha_vec: (C,) float, mask: (N, H, W) or None."""
    if x.ndim != 4:
        raise NotImplementedError("focal_softmax_loss kernel supports NCHW input only")

    N, C, H, W = x.shape
    HW = H * W
    has_mask = mask is not None

    # Narrow the target stream when the class count allows it (direct HBM-byte win
    # on this memory-bound kernel); the kernel widens back to int32 in-register.
    if C <= 127:
        tgt_dtype = jnp.int8
    elif C <= 32767:
        tgt_dtype = jnp.int16
    else:
        tgt_dtype = jnp.int32
    if jnp.dtype(target.dtype).itemsize > jnp.dtype(tgt_dtype).itemsize:
        target = target.astype(tgt_dtype)

    mask_itemsize = jnp.dtype(mask.dtype).itemsize if has_mask else 0
    TL = _pick_tile_lanes(HW, C, jnp.dtype(x.dtype).itemsize,
                          jnp.dtype(target.dtype).itemsize,
                          mask_itemsize, has_mask,
                          max_tile_lanes, vmem_budget_bytes)
    n_tiles = pl.cdiv(HW, TL)
    ragged = (HW % TL) != 0

    # Metadata-only reshapes; no transpose, no padding, no dtype widening of x/mask.
    x3 = x.reshape(N, C, HW)
    tgt3 = target.reshape(N, 1, HW)
    alpha2 = jnp.asarray(alpha_vec, jnp.float32).reshape(C, 1)

    inputs = [x3, tgt3]
    in_specs = [
        # NOTE: if the x DMA is still exposed in a trace, pipeline_mode=pl.Buffered(3)
        # on this spec is the next lever (costs one extra C*TL*itemsize buffer).
        pl.BlockSpec((1, C, TL), lambda n, j: (n, 0, j)),
        pl.BlockSpec((1, 1, TL), lambda n, j: (n, 0, j)),
    ]
    if has_mask:
        inputs.append(mask.reshape(N, 1, HW))      # original dtype; cast in-register
        in_specs.append(pl.BlockSpec((1, 1, TL), lambda n, j: (n, 0, j)))
    inputs.append(alpha2)
    in_specs.append(pl.BlockSpec((C, 1), lambda n, j: (0, 0)))

    out_shapes = [jax.ShapeDtypeStruct((N, 1, 128), jnp.float32)]
    out_specs = [pl.BlockSpec((1, 1, 128), lambda n, j: (n, 0, 0))]
    scratch = [pltpu.VMEM((1, TL), jnp.float32)]       # running sum(loss [* mask])
    if has_mask:
        out_shapes.append(jax.ShapeDtypeStruct((N, 1, 128), jnp.float32))
        out_specs.append(pl.BlockSpec((1, 1, 128), lambda n, j: (n, 0, 0)))
        scratch.append(pltpu.VMEM((1, TL), jnp.float32))   # running sum(mask)

    kernel = functools.partial(
        _focal_kernel, gamma=gamma, use_softmax=use_softmax,
        has_mask=has_mask, hw=HW, tl=TL, ragged=ragged)

    grid_spec = pltpu.PrefetchScalarGridSpec(
        num_scalar_prefetch=0,
        grid=(N, n_tiles),
        in_specs=in_specs,
        out_specs=tuple(out_specs),
        scratch_shapes=scratch,
    )

    outs = pl.pallas_call(
        kernel,
        out_shape=tuple(out_shapes),
        grid_spec=grid_spec,
        compiler_params=pltpu.CompilerParams(
            # N axis is safe to shard across TensorCores (v7x megacore): no
            # cross-n carried state, per-n output blocks.
            dimension_semantics=("parallel", "arbitrary"),
            vmem_limit_bytes=32 << 20),
    )(*inputs)

    if has_mask:
        loss_part, cnt_part = outs
        return loss_part[:, 0, 0].sum() / cnt_part[:, 0, 0].sum()
    (loss_part,) = outs
    return loss_part[:, 0, 0].sum() / float(N * HW)   # static denominator, unmasked mean


def make_alpha(n_classes, alpha=0.8):
    """Replicates the scalar-alpha branch of FocalSoftmaxLoss.__init__."""
    a = jnp.zeros((n_classes,), jnp.float32)
    a = a.at[0].set(alpha)
    a = a.at[1:].add(1.0 - alpha)
    return a


def _reference(x, target, alpha_vec, gamma=1, mask=None):
    N, C, H, W = x.shape
    pred = jnp.transpose(x, (0, 2, 3, 1)).reshape(-1, C).astype(jnp.float32)
    tgt = target.reshape(-1).astype(jnp.int32)
    sm = jax.nn.softmax(pred, axis=1)
    p_t = jnp.take_along_axis(sm, tgt[:, None], axis=1)[:, 0]
    logp = jnp.log(jnp.clip(p_t, 1e-8))
    a_t = jnp.asarray(alpha_vec, jnp.float32)[tgt]
    loss = -((1.0 - p_t) ** gamma) * logp * a_t
    if mask is not None:
        m = mask.reshape(-1).astype(jnp.float32)
        return (loss * m).sum() / m.sum()
    return loss.mean()


if __name__ == "__main__":
    key = jax.random.PRNGKey(0)
    k1, k2, k3, k4, k5 = jax.random.split(key, 5)

    # deterministic small inputs, matching the module's NCHW convention
    N, C, H, W = 2, 4, 16, 16
    x = jax.random.normal(k1, (N, C, H, W), dtype=jnp.float32)
    # producer-side narrow targets (int8 since C <= 127); widened in-register
    target = jax.random.randint(k2, (N, H, W), 0, C, dtype=jnp.int32).astype(jnp.int8)
    alpha_vec = make_alpha(C, alpha=0.8)
    gamma = 1

    # 1) unmasked (mean) path — single loss output, static denominator
    out = jax.block_until_ready(focal_softmax_loss(x, target, alpha_vec, gamma=gamma))
    ref = _reference(x, target, alpha_vec, gamma=gamma)
    assert jnp.allclose(out, ref, rtol=1e-5, atol=1e-6), (out, ref)

    # 2) masked path (masked sum / mask sum) — mask DMA'd as uint8, cast in-register
    mask = (jax.random.uniform(k3, (N, H, W)) > 0.3).astype(jnp.uint8)
    out_m = jax.block_until_ready(
        focal_softmax_loss(x, target, alpha_vec, gamma=gamma, mask=mask))
    ref_m = _reference(x, target, alpha_vec, gamma=gamma, mask=mask)
    assert jnp.allclose(out_m, ref_m, rtol=1e-5, atol=1e-6), (out_m, ref_m)

    # 3) ragged spatial tiling (HW = 384, forced TL = 256) exercises the
    #    last-tile-only validity masking via the pl.when split
    H2, W2 = 16, 24
    x2 = jax.random.normal(k4, (N, C, H2, W2), dtype=jnp.float32)
    target2 = jax.random.randint(k5, (N, H2, W2), 0, C, dtype=jnp.int32).astype(jnp.int8)
    out_r = jax.block_until_ready(
        focal_softmax_loss(x2, target2, alpha_vec, gamma=gamma, max_tile_lanes=256))
    ref_r = _reference(x2, target2, alpha_vec, gamma=gamma)
    assert jnp.allclose(out_r, ref_r, rtol=1e-5, atol=1e-6), (out_r, ref_r)

    print("KERNEL_OK")
</pallas_src>

<mosaic_0001>
module attributes {stable_mosaic.version = 11 : i64} {
  func.func @_focal_kernel(%arg0: i32, %arg1: i32, %arg2: memref<1x4x256xf32, #tpu.memory_space<vmem>>, %arg3: memref<1x1x256xi8, #tpu.memory_space<vmem>>, %arg4: memref<4x1xf32, #tpu.memory_space<vmem>>, %arg5: memref<1x1x128xf32, #tpu.memory_space<vmem>>, %arg6: memref<1x256xf32, #tpu.memory_space<vmem>>) attributes {dimension_semantics = [#tpu.dimension_semantics<parallel>, #tpu.dimension_semantics<arbitrary>], iteration_bounds = array<i64: 2, 1>, scalar_prefetch = 0 : i64, scratch_operands = 1 : i64, tpu.core_type = #tpu.core_type<tc>, window_params = [{transform_indices = @transform_0, window_bounds = array<i64: 1, 4, 256>}, {transform_indices = @transform_1, window_bounds = array<i64: 1, 1, 256>}, {pipeline_mode = #tpu.pipeline_mode<synchronous>, transform_indices = @transform_2, window_bounds = array<i64: 4, 1>}, {transform_indices = @transform_3, window_bounds = array<i64: 1, 1, 128>}]} {
    %c0_i32 = arith.constant 0 : i32
    %0 = arith.cmpi eq, %arg1, %c0_i32 : i32
    %1 = arith.extui %0 : i1 to i32
    %c0_i32_0 = arith.constant 0 : i32
    %2 = arith.cmpi ne, %1, %c0_i32_0 : i32
    scf.if %2 {
      %cst_22 = arith.constant 0.000000e+00 : f32
      %46 = vector.broadcast %cst_22 : f32 to vector<1x256xf32>
      %c0_23 = arith.constant 0 : index
      %c0_24 = arith.constant 0 : index
      %47 = vector.load %arg6[%c0_23, %c0_24] : memref<1x256xf32, #tpu.memory_space<vmem>>, vector<1x256xf32>
      tpu.vector_store %arg6[%c0_23, %c0_24], %46 {strides = array<i32>} : memref<1x256xf32, #tpu.memory_space<vmem>>, vector<1x256xf32>,
    } else {
    }
    %c0 = arith.constant 0 : index
    %c0_1 = arith.constant 0 : index
    %c0_2 = arith.constant 0 : index
    %3 = vector.load %arg2[%c0, %c0_1, %c0_2] : memref<1x4x256xf32, #tpu.memory_space<vmem>>, vector<1x4x256xf32>
    %4 = vector.shape_cast %3 : vector<1x4x256xf32> to vector<4x256xf32>
    %c0_3 = arith.constant 0 : index
    %c0_4 = arith.constant 0 : index
    %c0_5 = arith.constant 0 : index
    %5 = vector.load %arg3[%c0_3, %c0_4, %c0_5] : memref<1x1x256xi8, #tpu.memory_space<vmem>>, vector<1x1x256xi8>
    %6 = vector.shape_cast %5 : vector<1x1x256xi8> to vector<1x256xi8>
    %7 = arith.extsi %6 : vector<1x256xi8> to vector<1x256xi32>
    %c0_6 = arith.constant 0 : index
    %c0_7 = arith.constant 0 : index
    %8 = vector.load %arg4[%c0_6, %c0_7] : memref<4x1xf32, #tpu.memory_space<vmem>>, vector<4x1xf32>
    %9 = tpu.iota {dimensions = array<i32: 0>} : vector<4x256xi32>
    %10 = vector.broadcast %7 : vector<1x256xi32> to vector<4x256xi32>
    %11 = arith.cmpi eq, %9, %10 : vector<4x256xi32>
    %cst = arith.constant 0.000000e+00 : f32
    %12 = vector.shape_cast %8 : vector<4x1xf32> to vector<4x1xf32>
    %13 = vector.broadcast %12 : vector<4x1xf32> to vector<4x256xf32>
    %14 = vector.broadcast %cst : f32 to vector<4x256xf32>
    %15 = arith.select %11, %13, %14 : vector<4x256xi1>, vector<4x256xf32>
    %cst_8 = arith.constant dense<0.000000e+00> : vector<256xf32>
    %16 = vector.multi_reduction <add>, %15, %cst_8 [0] : vector<4x256xf32> to vector<256xf32>
    %17 = vector.shape_cast %16 : vector<256xf32> to vector<1x256xf32>
    %cst_9 = arith.constant dense<0xFF800000> : vector<256xf32>
    %18 = vector.multi_reduction <maximumf>, %4, %cst_9 [0] : vector<4x256xf32> to vector<256xf32>
    %19 = vector.shape_cast %18 : vector<256xf32> to vector<1x256xf32>
    %20 = vector.broadcast %19 : vector<1x256xf32> to vector<4x256xf32>
    %21 = arith.subf %4, %20 : vector<4x256xf32>
    %22 = math.exp %21 : vector<4x256xf32>
    %cst_10 = arith.constant dense<0.000000e+00> : vector<256xf32>
    %23 = vector.multi_reduction <add>, %22, %cst_10 [0] : vector<4x256xf32> to vector<256xf32>
    %24 = vector.shape_cast %23 : vector<256xf32> to vector<1x256xf32>
    %cst_11 = arith.constant 0.000000e+00 : f32
    %25 = vector.broadcast %cst_11 : f32 to vector<4x256xf32>
    %26 = arith.select %11, %21, %25 : vector<4x256xi1>, vector<4x256xf32>
    %cst_12 = arith.constant dense<0.000000e+00> : vector<256xf32>
    %27 = vector.multi_reduction <add>, %26, %cst_12 [0] : vector<4x256xf32> to vector<256xf32>
    %28 = vector.shape_cast %27 : vector<256xf32> to vector<1x256xf32>
    %29 = math.log %24 : vector<1x256xf32>
    %30 = arith.subf %28, %29 : vector<1x256xf32>
    %31 = math.exp %30 : vector<1x256xf32>
    %cst_13 = arith.constant -18.420681 : f32
    %32 = vector.broadcast %cst_13 : f32 to vector<1x256xf32>
    %33 = arith.maximumf %30, %32 : vector<1x256xf32>
    %cst_14 = arith.constant 1.000000e+00 : f32
    %34 = vector.broadcast %cst_14 : f32 to vector<1x256xf32>
    %35 = arith.subf %34, %31 : vector<1x256xf32>
    %cst_15 = arith.constant 0.000000e+00 : f32
    %36 = vector.broadcast %cst_15 : f32 to vector<1x256xf32>
    %37 = arith.subf %36, %35 : vector<1x256xf32>
    %38 = arith.mulf %37, %33 : vector<1x256xf32>
    %39 = arith.mulf %38, %17 : vector<1x256xf32>
    %c0_16 = arith.constant 0 : index
    %c0_17 = arith.constant 0 : index
    %40 = vector.load %arg6[%c0_16, %c0_17] : memref<1x256xf32, #tpu.memory_space<vmem>>, vector<1x256xf32>
    %41 = arith.addf %40, %39 : vector<1x256xf32>
    %c0_18 = arith.constant 0 : index
    %c0_19 = arith.constant 0 : index
    %42 = vector.load %arg6[%c0_18, %c0_19] : memref<1x256xf32, #tpu.memory_space<vmem>>, vector<1x256xf32>
    tpu.vector_store %arg6[%c0_18, %c0_19], %41 {strides = array<i32>} : memref<1x256xf32, #tpu.memory_space<vmem>>, vector<1x256xf32>,
    %c0_i32_20 = arith.constant 0 : i32
    %43 = arith.cmpi eq, %arg1, %c0_i32_20 : i32
    %44 = arith.extui %43 : i1 to i32
    %c0_i32_21 = arith.constant 0 : i32
    %45 = arith.cmpi ne, %44, %c0_i32_21 : i32
    scf.if %45 {
      %c0_22 = arith.constant 0 : index
      %c0_23 = arith.constant 0 : index
      %46 = vector.load %arg6[%c0_22, %c0_23] : memref<1x256xf32, #tpu.memory_space<vmem>>, vector<1x256xf32>
      %47 = vector.shape_cast %46 : vector<1x256xf32> to vector<1x1x256xf32>
      %cst_24 = arith.constant dense<0.000000e+00> : vector<1xf32>
      %48 = vector.multi_reduction <add>, %47, %cst_24 [1, 2] : vector<1x1x256xf32> to vector<1xf32>
      %49 = vector.shape_cast %48 : vector<1xf32> to vector<1x1x1xf32>
      %50 = vector.extract %49[0, 0, 0] : f32 from vector<1x1x1xf32>
      %51 = vector.broadcast %50 : f32 to vector<1x1x128xf32>
      %c0_25 = arith.constant 0 : index
      %c0_26 = arith.constant 0 : index
      %c0_27 = arith.constant 0 : index
      %52 = vector.load %arg5[%c0_25, %c0_26, %c0_27] : memref<1x1x128xf32, #tpu.memory_space<vmem>>, vector<1x1x128xf32>
      tpu.vector_store %arg5[%c0_25, %c0_26, %c0_27], %51 {strides = array<i32>} : memref<1x1x128xf32, #tpu.memory_space<vmem>>, vector<1x1x128xf32>,
    } else {
    }
    return
  }
  func.func @transform_0(%arg0: i32, %arg1: i32) -> (i32, i32, i32) {
    %c0_i32 = arith.constant 0 : i32
    %c0_i32_0 = arith.constant 0 : i32
    return %arg0, %c0_i32, %arg1 : i32, i32, i32
  }
  func.func @transform_1(%arg0: i32, %arg1: i32) -> (i32, i32, i32) {
    %c0_i32 = arith.constant 0 : i32
    %c0_i32_0 = arith.constant 0 : i32
    return %arg0, %c0_i32, %arg1 : i32, i32, i32
  }
  func.func @transform_2(%arg0: i32, %arg1: i32) -> (i32, i32) {
    %c0_i32 = arith.constant 0 : i32
    %c0_i32_0 = arith.constant 0 : i32
    %c0_i32_1 = arith.constant 0 : i32
    return %c0_i32, %c0_i32_0 : i32, i32
  }
  func.func @transform_3(%arg0: i32, %arg1: i32) -> (i32, i32, i32) {
    %c0_i32 = arith.constant 0 : i32
    %c0_i32_0 = arith.constant 0 : i32
    %c0_i32_1 = arith.constant 0 : i32
    return %arg0, %c0_i32, %c0_i32_0 : i32, i32, i32
  }
}

</mosaic_0001>

<bundles_post_ra>
// kernel: tpu_custom_call.1
= control target key start
LH: loop header
LB: loop body
LE: loop exit
PB: predicated region body
PF: predicated region fallthrough
CT: control target
= control target key end

     0   :  { %8 = vsyncpa [#allocation4], 0  ;;  %s954_s0 = inlined_call_operand.hbm [shape: f32[2,4,256], index: 0, kind: input, shape index: {}]   ;;  %s955_s1 = inlined_call_operand.vmem [shape: s8[2,1,256], index: 1, kind: input, shape index: {}]   ;;  %s956_s2 = inlined_call_operand.vmem [shape: f32[4,1], index: 2, kind: input, shape index: {}]   ;;  %s957_s3 = inlined_call_operand.hbm [shape: f32[2,1,128], index: 3, kind: output, shape index: {}]  }
   0x1   :  { %10 = vsyncpa [#allocation4 + $0x1], 0 }
   0x2   :  { %11 = vsyncpa [#allocation5], 0 }
   0x3   :  { %13 = vsyncpa [#allocation5 + $0x1], 0  ;;  %s759_s12 = smov 0   ;;  %s761_s13 = smov 0  }
   0x4   :  { %s763_s14 = smov 0   ;;  %s765_s15 = smov 0  }
   0x5   :  { %s767_s16 = smov 0   ;;  %s769_s17 = smov 0  }
   0x6 LB: > { %s531_s18 = sadd.s32 4294967295, %s732_s17   ;;  %s532_s19 = sadd.s32 4294967294, %s732_s17   ;;  %s732_s17 = sphi %s769_s17, %s19_s17   ;;  %s728_s16 = sphi %s767_s16, %s975_s16   ;;  %s724_s15 = sphi %s765_s15, %s974_s15   ;;  %s720_s14 = sphi %s763_s14, %s973_s14   ;;  %s716_s13 = sphi %s761_s13, %s972_s13   ;;  %s712_s12 = sphi %s759_s12, %s971_s12  }
   0x7   : > { %s31_s20 = sadd.s32 1, %s728_s16  ;;  %s40_s21 = sadd.s32 1, %s720_s14 }
   0x8   : > { %p33_p0 = scmp.ge.s32.totalorder %s31_s20, 2  ;;  %p47_p1 = scmp.ne.s32.totalorder %s720_s14, %s716_s13 }
   0x9   : > { %p48_p2 = scmp.eq.s32.totalorder %s732_s17, 0  ;;  %p53_p3 = scmp.ne.s32.totalorder %s716_s13, %s712_s12 }
   0xa   : > { %s977_s20 = smov (%p33_p0, %s31_s20), 0  ;;  %p54_p5 = scmp.eq.s32.totalorder %s531_s18, 0 }
   0xb   : > { %p800_p4 = por %p48_p2, %p47_p1  ;;  %s35_s23 = ssub.s32 %s728_s16, %s977_s20 }
   0xc   : > { %p126_p6 = scmp.eq.s32.totalorder %s531_s18, 1  ;;  %p38_p7 = scmp.eq.s32.totalorder %s35_s23, 0 }
   0xd   : > { %p806_p8 = por %p54_p5, %p53_p3  ;;  %p132_p10 = scmp.eq.s32.totalorder %s532_s19, 1 }
   0xe   : > { %p810_p9 = por %p126_p6, %p47_p1  ;;  %p559_p13 = scmp.lt.s32.totalorder %s732_s17, 2 }
   0xf   : > { %s815_s26 = scalar_select %p38_p7, %s720_s14, %s40_s21  }
  0x10   : > { %p817_p11 = por %p132_p10, %p53_p3  ;;  %s155_s28 = sand.u32 1, %s720_s14  }
  0x11   : > { %s535_s29 = sshll.u32 %s155_s28, 3  ;;  %s544_s30 = sshll.u32 %s728_s16, 7 }
  0x12   : > { %s961_s27 = scalar_select %p817_p11, 1, 0 }
  0x13   : > { %s167_s6 = scalar_lea.hbm %s954_s0, %s544_s30  ;;  %s159_s7 = scalar_lea.vmem [#allocation3], %s535_s29 }
  0x14   : > { %s169_s8 = sshll.u32 %s159_s7, 4  ;;  %p830_p0 = pnand %p559_p13, %p800_p4  ;;  %s170_s8 = int_to_ptr.vmem [resolvable:$true] %s169_s8 }
  0x15   : > { %p538_p1 = scmp.ge.s32.totalorder %s732_s17, 1  ;;  %p186_p2 = scmp.lt.s32.totalorder %s732_s17, 3 }
  0x16   : > { %s156_s10 = scalar_lea.sflag [#allocation4], %s155_s28  ;;  %p626_p3 = pneg %p830_p0 }
  0x17   : > { %s637_s11 = scalar_lea.vmem %s170_s8, 128  ;;  %s734_s18 = smov [#allocation3]  }
  0x18   : > { %p638_p5 = scmp.ne.s32.totalorder %s170_s8, %s637_s11  ;;  %s642_s19 = sshll.u32 %s734_s18, 4  ;;  %s643_s19 = int_to_ptr.vmem [resolvable:$false] %s642_s19 }
  0x19   : > { %s644_s21 = scalar_lea.vmem %s643_s19, 256  ;;  %p645_p10 = scmp.lt.s32.totalorder %s170_s8, %s643_s19 }
  0x1a   : > { %p640_p6 = pnand %p638_p5, %p626_p3  ;;  %p646_p12 = scmp.lt.s32.totalorder %s644_s21, %s637_s11 }
  0x1c   : > { %p641_p7 = pneg %p640_p6  ;;  %p647_p4 = por %p646_p12, %p645_p10 }
  0x1e   : > { %p648_p13 = pnand %p647_p4, %p641_p7 }
  0x20   : > { %651 = shalt.err (!%p648_p13)
}
  0x21   : > { %554 = dma.hbm_to_vmem [thread:$0]  (!%p830_p0), %s167_s6, 128, %s170_s8, %s156_s10  }
  0x22   : > { %p187_p11 = pnand %p538_p1, %p186_p2 }
  0x23   : > { %s845_s22 = sand.u32 (!%p187_p11), 1, %s716_s13  }
  0x24   : > { %190 = sbr.rel (%p187_p11) target bundleno = 419 (0x1a3), region = 32  ;;  %s539_s23 = sshll.u32 (!%p187_p11), %s845_s22, 3 }
  0x25   : > { %s193_s28 = scalar_lea.sflag (!%p187_p11), [#allocation4], %s845_s22  ;;  %s196_s29 = scalar_lea.vmem (!%p187_p11), [#allocation3], %s539_s23 }
  0x29   : > { %703 = dma.done.wait (%p806_p8), %s193_s28, 128  }
  0x2a   : > { %705 = vsyncadd (%p806_p8), %s193_s28, 4294967168  ;;  %v240_v0 = vlaneseq  ;;  %v735_v1 = vmov 0   ;;  %v736_v3 = vmov 0.0   ;;  %vm276_vm1 = vcmask 1043456   ;;  %v248_v4 = vld [vmem:[%s956_s2] sm:$0xf] }
  0x2b   : > { %612 = vset.pattern.permute.xlu0 %v735_v1  ;;  %v245_v5 = vld [vmem:[%s196_s29] sm:$0xff]  ;;  %p228_p8 = scmp.lt.s32.totalorder %s724_s15, 1  ;;  %vm411_vm4 = vcmask 1040384   ;;  %s225_s9 = scalar_lea.vmem [#allocation6], %s845_s22 }
  0x2c   : > { %vm853_vm0 = vcmp.lt.s32.totalorder %v240_v0, 256  ;;  %271 = vperm.xlu0 %612, %v248_v4   ;;  %v292_v6 = vcombine.high %v245_v5, %v245_v5  ;;  %v294_v7 = vsel %vm276_vm1, %v245_v5, -inf  ;;  %v869_v26 = vshrl.u32 %v240_v0, 7  ;;  %s439_s10 = sshll.u32 %s225_s9, 4  ;;  %s541_s11 = sshll.u32 %s724_s15, 4  ;;  %s909_s10 = int_to_ptr.vmem [resolvable:$true] %s439_s10 }
  0x2d   : > { %244 = vst.msk [vmem:[#allocation2] sm:$0x3] %vm853_vm0, %v736_v3  ;;  %v295_v8 = vrot.slane %v294_v7, 4  ;;  %s229_s24 = scalar_select %p228_p8, %s724_s15, 1 }
  0x2e   : > { %v301_v9 = vsel %vm276_vm1, %v292_v6, -inf  ;;  %v874_v30 = vsub.s32 0, %v869_v26  ;;  %v257_v32 = vsub.s32 4, %v869_v26  ;;  %s437_s23 = scalar_lea.hbm %s957_s3, %s541_s11  ;;  %s427_s28 = scalar_lea.sflag [#allocation5], %s845_s22 }
  0x2f   : > { %v296_v10 = vmax.f32 %v294_v7, %v295_v8  ;;  %v302_v11 = vrot.slane %v301_v9, 4  ;;  %s540_s5 = sshll.u32 %s229_s24, 1  ;;  %s652_s29 = scalar_lea.vmem %s909_s10, 16 }
  0x30   : > { %s234_s8 = scalar_lea.vmem %s955_s1, %s540_s5  ;;  %p653_p11 = scmp.ne.s32.totalorder %s909_s10, %s652_s29 }
  0x31   : > { %v303_v12 = vmax.f32 %v301_v9, %v302_v11  ;;  %v297_v13 = vrot.slane %v296_v10, 2  ;;  %v246_v27 = vld [vmem:[%s234_s8] sm:$0x3]  ;;  %s738_s30 = smov [#allocation6]  }
  0x32   : > { %v247_v31 = vunpack.c.0.s8 %v246_v27  ;;  %v737_v27 = vmov 1966171168   ;;  %p654_p12 = pnand %p653_p11, %p810_p9  ;;  %s656_s15 = sshll.u32 %s738_s30, 4  ;;  %s657_s15 = int_to_ptr.vmem [resolvable:$false] %s656_s15 }
  0x33   : > { %v304_v14 = vrot.slane %v303_v12, 2  ;;  %v298_v15 = vmax.f32 %v296_v10, %v297_v13  ;;  %s658_s4 = scalar_lea.vmem %s657_s15, 32  ;;  %p659_p1 = scmp.lt.s32.totalorder %s909_s10, %s657_s15 }
  0x34   : > { %v254_v35 = vrot.slane %v247_v31, %v874_v30  ;;  %v258_v36 = vrot.slane %v247_v31, %v257_v32  ;;  %p655_p0 = pneg %p654_p12  ;;  %p660_p2 = scmp.lt.s32.totalorder %s658_s4, %s652_s29 }
  0x35   : > { %v305_v16 = vmax.f32 %v303_v12, %v304_v14  ;;  %v299_v17 = vrot.slane %v298_v15, 1 }
  0x36   : > { %v262_v39 = vrot.slane %v254_v35, %v874_v30  ;;  %v266_v40 = vrot.slane %v258_v36, %v874_v30  ;;  %p661_p3 = por %p660_p2, %p659_p1 }
  0x37   : > { %v306_v18 = vrot.slane %v305_v16, 1  ;;  %v300_v19 = vmax.f32 %v298_v15, %v299_v17 }
  0x38   : > { %vm881_vm2 = vcmp.eq.s32.totalorder %v869_v26, %v262_v39  ;;  %vm886_vm3 = vcmp.eq.s32.totalorder %v869_v26, %v266_v40  ;;  %p662_p5 = pnand %p661_p3, %p655_p0 }
  0x39   : > { %v307_v20 = vmax.f32 %v305_v16, %v306_v18 }
  0x3b   : > { %v310_v21 = vcombine.low %v300_v19, %v307_v20 }
  0x3d   : > { %v312_v22 = vsub.f32 %v245_v5, %v310_v21 }
  0x3f   : > { %v313_v23 = vmul.f32 1.442695, %v312_v22  ;;  %v333_v44 = vcombine.high %v312_v22, %v312_v22  ;;  %v335_v48 = vsel %vm881_vm2, %v312_v22, 0.0 }
  0x40   : > { %v337_v52 = vsel %vm276_vm1, %v335_v48, 0.0 }
  0x41   : > { %614 = vpow2.f32 %v313_v23  ;;  %v336_v49 = vsel %vm886_vm3, %v333_v44, 0.0  ;;  %v338_v55 = vrot.slane %v337_v52, 4 }
  0x42   : > { %v344_v53 = vsel %vm276_vm1, %v336_v49, 0.0 }
  0x43   : > { %v345_v57 = vrot.slane %v344_v53, 4  ;;  %v339_v58 = vadd.f32 %v338_v55, %v337_v52 }
  0x45   : > { %v346_v59 = vadd.f32 %v345_v57, %v344_v53  ;;  %v340_v60 = vrot.slane %v339_v58, 2  ;;  %v407_v53 = vsub.s32 1, %v869_v26 }
  0x47   : > { %v347_v61 = vrot.slane %v346_v59, 2  ;;  %v341_v62 = vadd.f32 %v340_v60, %v339_v58 }
  0x49   : > { %v348_v63 = vadd.f32 %v347_v61, %v346_v59  ;;  %v342_v0 = vrot.slane %v341_v62, 1 }
  0x4b   : > { %v349_v3 = vrot.slane %v348_v63, 1  ;;  %v343_v5 = vadd.f32 %v342_v0, %v341_v62 }
  0x4d   : > { %v350_v7 = vadd.f32 %v349_v3, %v348_v63 }
  0x4e   : > { %v615_v24 = vpop.eup %614 }
  0x4f   : > { %v316_v25 = vcombine.high %v615_v24, %v615_v24  ;;  %v318_v28 = vsel %vm276_vm1, %v615_v24, 0.0 }
  0x50   : > { %v319_v33 = vrot.slane %v318_v28, 4 }
  0x51   : > { %v325_v29 = vsel %vm276_vm1, %v316_v25, 0.0 }
  0x52   : > { %v326_v34 = vrot.slane %v325_v29, 4  ;;  %v320_v37 = vadd.f32 %v319_v33, %v318_v28  ;;  %v376_v28 = vunpack.c.l.s4 %v737_v27 }
  0x54   : > { %v327_v38 = vadd.f32 %v326_v34, %v325_v29  ;;  %v321_v41 = vrot.slane %v320_v37, 2 }
  0x56   : > { %v328_v42 = vrot.slane %v327_v38, 2  ;;  %v322_v46 = vadd.f32 %v321_v41, %v320_v37 }
  0x58   : > { %v329_v47 = vadd.f32 %v328_v42, %v327_v38  ;;  %v323_v50 = vrot.slane %v322_v46, 1  ;;  %v377_v38 = vunpack.c.0.s8 %v376_v28 }
  0x5a   : > { %v330_v51 = vrot.slane %v329_v47, 1  ;;  %v324_v54 = vadd.f32 %v323_v50, %v322_v46  ;;  %v380_v45 = vsub.s32 %v377_v38, %v869_v26  ;;  %v371_v50 = vld [vmem:[#allocation2] sm:$0x3] }
  0x5c   : > { %v331_v56 = vadd.f32 %v330_v51, %v329_v47  ;;  %616 = vlog2.f32 %v324_v54 }
  0x5e   : > { %618 = vlog2.f32 %v331_v56 }
  0x69   : > { %v617_v1 = vpop.eup %616 }
  0x6a   : > { %v352_v6 = vmul.f32 0.6931472, %v617_v1 }
  0x6b   : > { %v619_v4 = vpop.eup %618 }
  0x6c   : > { %v354_v8 = vmul.f32 0.6931472, %v619_v4  ;;  %v355_v9 = vsub.f32 %v343_v5, %v352_v6 }
  0x6e   : > { %v356_v10 = vsub.f32 %v350_v7, %v354_v8  ;;  %v357_v11 = vmul.f32 1.442695, %v355_v9  ;;  %v361_v29 = vmax.f32 %v355_v9, -18.420681 }
  0x70   : > { %v359_v12 = vmul.f32 1.442695, %v356_v10  ;;  %620 = vpow2.f32 %v357_v11  ;;  %v362_v31 = vmax.f32 %v356_v10, -18.420681 }
  0x72   : > { %622 = vpow2.f32 %v359_v12 }
  0x7d   : > { %v621_v13 = vpop.eup %620 }
  0x7e   : > { %v363_v22 = vsub.f32 1.0, %v621_v13 }
  0x7f   : > { %v623_v14 = vpop.eup %622 }
  0x80   : > { %v364_v23 = vsub.f32 1.0, %v623_v14  ;;  %v365_v34 = vsub.f32 0.0, %v363_v22 }
  0x82   : > { %v366_v35 = vsub.f32 0.0, %v364_v23  ;;  %v367_v41 = vmul.f32 %v365_v34, %v361_v29 }
  0x84   : > { %v368_v42 = vmul.f32 %v366_v35, %v362_v31 }
  0xa7   : > { %v272_v15 = vpop.permute.xlu0 %271 }
  0xa8   : > { %v274_v16 = vsel %vm881_vm2, %v272_v15, 0.0  ;;  %v275_v17 = vsel %vm886_vm3, %v272_v15, 0.0 }
  0xa9   : > { %v277_v18 = vsel %vm276_vm1, %v274_v16, 0.0  ;;  %v284_v19 = vsel %vm276_vm1, %v275_v17, 0.0 }
  0xaa   : > { %v278_v20 = vrot.slane %v277_v18, 4  ;;  %v285_v21 = vrot.slane %v284_v19, 4 }
  0xac   : > { %v279_v24 = vadd.f32 %v278_v20, %v277_v18  ;;  %v286_v25 = vadd.f32 %v285_v21, %v284_v19 }
  0xae   : > { %v280_v32 = vrot.slane %v279_v24, 2  ;;  %v287_v33 = vrot.slane %v286_v25, 2 }
  0xb0   : > { %v281_v36 = vadd.f32 %v280_v32, %v279_v24  ;;  %v288_v37 = vadd.f32 %v287_v33, %v286_v25 }
  0xb2   : > { %v282_v39 = vrot.slane %v281_v36, 1  ;;  %v289_v40 = vrot.slane %v288_v37, 1 }
  0xb4   : > { %v283_v43 = vadd.f32 %v282_v39, %v281_v36  ;;  %v290_v44 = vadd.f32 %v289_v40, %v288_v37 }
  0xb6   : > { %v369_v46 = vmul.f32 %v367_v41, %v283_v43  ;;  %v370_v47 = vmul.f32 %v368_v42, %v290_v44 }
  0xb8   : > { %v374_v48 = vcombine.low %v369_v46, %v370_v47 }
  0xba   : > { %v381_v49 = vrot.slane %v374_v48, %v380_v45 }
  0xbc   : > { %v388_v51 = vrot.slane %v381_v49, %v380_v45 }
  0xbe   : > { %v390_v52 = vadd.f32 %v388_v51, %v371_v50 }
  0xc0   : > { %395 = vst.msk [vmem:[#allocation2] sm:$0x3] %vm853_vm0, %v390_v52 }
  0xc7   : > { %v399_v54 = vld [vmem:[#allocation2] sm:$0x3] }
  0xc8   : > { %v404_v55 = vrot.slane %v399_v54, %v874_v30  ;;  %v408_v56 = vrot.slane %v399_v54, %v407_v53 }
  0xca   : > { %v412_v57 = vsel %vm411_vm4, %v404_v55, 0.0  ;;  %v413_v58 = vsel %vm411_vm4, %v408_v56, 0.0 }
  0xcb   : > { %v414_v59 = vadd.f32 %v413_v58, %v412_v57 }
  0xcd   : > { %415 = vadd.xlane.f32.xlu0 %v414_v59 }
 0x156   : > { %v416_v60 = vpop.xlane.xlu0 %415 }
 0x157   : > { %v417_v61 = vrot.slane %v416_v60, 4 }
 0x159   : > { %v418_v62 = vadd.f32 %v417_v61, %v416_v60 }
 0x15b   : > { %v419_v63 = vrot.slane %v418_v62, 2 }
 0x15d   : > { %v420_v2 = vadd.f32 %v419_v63, %v418_v62 }
 0x15f   : > { %v421_v0 = vrot.slane %v420_v2, 1 }
 0x161   : > { %v422_v26 = vadd.f32 %v421_v0, %v420_v2 }
 0x163   : > { %545 = vpush %v422_v26 }
 0x194   : > { %s546_s18 = spop %545 }
 0x195   : > { %v424_v30 = vstv %s546_s18 }
 0x196   : > { %425 = vst [vmem:[%s225_s9] sm:$0x1] %v424_v30 }
 0x197   : > { %665 = shalt.err (!%p662_p5)
}
 0x198   : > { %s666_s24 = scalar_lea.hbm %s437_s23, 16  ;;  %s670_s6 = scalar_lea.hbm %s957_s3, 32 }
 0x199   : > { %p667_p6 = scmp.ne.s32.totalorder %s437_s23, %s666_s24  ;;  %p671_p4 = scmp.lt.s32.totalorder %s437_s23, %s957_s3 }
 0x19a   : > { %p672_p13 = scmp.lt.s32.totalorder %s670_s6, %s666_s24 }
 0x19b   : > { %p668_p7 = pnand %p667_p6, %p810_p9 }
 0x19c   : > { %p673_p8 = por %p672_p13, %p671_p4 }
 0x19d   : > { %p669_p10 = pneg %p668_p7 }
 0x19f   : > { %p674_p11 = pnand %p673_p8, %p669_p10 }
 0x1a1   : > { %677 = shalt.err (!%p674_p11)
}
 0x1a2   : > { %549 = dma.vmem_to_hbm [thread:$0]  (%p810_p9), %s909_s10, 16, %s437_s23, %s427_s28  }
 0x1a3 PF: > { %s451_s9 = sand.u32 1, %s712_s12   ;;  %p969_p12 = scmp.ne.s32.totalorder %s961_s27, 0 }
 0x1a4   : > { %p970_p0 = scmp.ge.s32.totalorder %s732_s17, 2  ;;  %s452_s11 = scalar_lea.sflag [#allocation5], %s451_s9 }
 0x1a6   : > { %p556_p1 = pnand %p970_p0, %p969_p12 }
 0x1a8   : > { %p557_p2 = pneg %p556_p1 }
 0x1aa   : > { %707 = dma.done.wait (%p557_p2), %s452_s11, 16  }
 0x1ab   : > { %709 = vsyncadd (%p557_p2), %s452_s11, 4294967280  ;;  %s19_s17 = sadd.s32 1, %s732_s17   ;;  %s971_s12 = smov %s716_s13 }
 0x1ac   : > { %p16_p3 = scmp.ge.s32.totalorder %s19_s17, 4   ;;  %s972_s13 = smov %s720_s14 }
 0x1ad   : > { %s973_s14 = smov %s815_s26  ;;  %s974_s15 = smov %s728_s16 }
 0x1ae   : > { %s975_s16 = smov %s977_s20  ;;  %18 = sbr.rel (!%p16_p3) target bundleno = 6 (0x6), region = 88 }
 0x1b3   :  { %456 = vsyncpa [#allocation4], 1 }
 0x1b4   :  { %458 = vsyncpa [#allocation4 + $0x1], 1 }
 0x1b5   :  { %459 = vsyncpa [#allocation5], 1 }
 0x1b6   :  { %461 = vsyncpa [#allocation5 + $0x1], 1 }

</bundles_post_ra>
